<compile_context>
chip_gen: v7x
topology: tpu7x:2x2x1
jax: 0.10.0
libtpu: 0.0.40
codegen_flags: <defaults>
</compile_context>

<pallas_src>
import jax
import jax.numpy as jnp
from jax import lax
from jax.experimental import pallas as pl
from jax.experimental.pallas import tpu as pltpu


def _round_up(x, m):
    return ((x + m - 1) // m) * m


def span_scorer_kernel(x_ref, w1_ref, b1_ref, w2_ref, b2_ref, o_ref):
    # ---- layer 1 on the MXU: hidden = relu(x @ W1 + b1), f32 accumulate ----
    h = jnp.dot(x_ref[...], w1_ref[...], preferred_element_type=jnp.float32)   # (tm, H) f32
    h = jnp.maximum(h + b1_ref[...], 0.0)                                      # (tm,H)+(1,H)
    # ---- layer 2 on the MXU, M=1 form: contract H of w2 (1,H) against H of h (tm,H) ----
    # -> lane-dense (1, tm) scores; no XLU rotate-add tree, no second full-width matmul.
    s = lax.dot_general(w2_ref[...], h,
                        dimension_numbers=(((1,), (1,)), ((), ())),
                        preferred_element_type=jnp.float32)                    # (1, tm) f32
    o_ref[...] = (s + b2_ref[0])[None].astype(o_ref.dtype)                     # (1, 1, tm)


def span_scorer(x, w1, b1, w2, b2, *, tm=4096):
    """x: (..., D_in); w1: (D_in, H)  [= torch weight transposed]; b1: (H,) or (1,H);
    w2: (1,H)/(H,1)/(H,); b2: scalar-ish.

    Returns (..., 1) float32 scores = relu(x @ w1 + b1) @ w2 + b2 (dropout = identity).
    Pass bf16 x (producer-side) for the half-HBM-bandwidth fast path; no cast is done here.
    """
    x = jnp.asarray(x)
    lead_shape = x.shape[:-1]
    D = x.shape[-1]
    x = x.reshape(-1, D)                                     # metadata-only for contiguous x
    N = x.shape[0]

    w1 = jnp.asarray(w1)
    if w1.ndim != 2 or w1.shape[0] != D:
        raise ValueError(
            f"w1 must have shape (D_in={D}, H); got {w1.shape}. "
            "If you have the torch nn.Linear layout (H, D_in), pass w1.T.")
    H = w1.shape[1]

    w1 = w1.astype(x.dtype)                                  # tiny one-time cast; keeps layer 1 MXU-native
    b1 = jnp.asarray(b1, jnp.float32).reshape(1, H)
    w2 = jnp.asarray(w2, jnp.float32).reshape(1, H)          # row layout for the M=1 dot_general
    b2 = jnp.asarray(b2, jnp.float32).reshape(-1)[:1]        # (1,) scalar in SMEM

    # --- row tiling: big tile, clamped for small N; ragged last block (no padding pass) ---
    tm = max(8, _round_up(min(tm, _round_up(N, 8)), 8))
    num_tiles = pl.cdiv(N, tm)

    out = pl.pallas_call(
        span_scorer_kernel,
        out_shape=jax.ShapeDtypeStruct((num_tiles, 1, tm), jnp.float32),
        grid_spec=pltpu.PrefetchScalarGridSpec(
            num_scalar_prefetch=0,
            grid=(num_tiles,),
            in_specs=[
                pl.BlockSpec((tm, D), lambda i: (i, 0)),     # span-embedding tile (streamed)
                pl.BlockSpec((D, H), lambda i: (0, 0)),      # W1 (resident across grid steps)
                pl.BlockSpec((1, H), lambda i: (0, 0)),      # b1 (resident)
                pl.BlockSpec((1, H), lambda i: (0, 0)),      # w2 row (resident)
                pl.BlockSpec(memory_space=pltpu.MemorySpace.SMEM),  # b2 scalar
            ],
            out_specs=pl.BlockSpec((1, 1, tm), lambda i: (i, 0, 0)),  # lane-dense score slab
        ),
        compiler_params=pltpu.CompilerParams(
            dimension_semantics=("parallel",)),
    )(x, w1, b1, w2, b2)

    # Rows beyond N in the last block are garbage; trim them here (nothing downstream may
    # consume the untrimmed slab).
    return out.reshape(-1)[:N].reshape(*lead_shape, 1)


def span_scorer_ref(x, w1, b1, w2, b2):
    """Pure-JAX reference (dropout = identity)."""
    h = jnp.maximum(jnp.dot(x, w1) + b1.reshape(1, -1), 0.0)
    return jnp.sum(h * w2.reshape(1, -1), axis=-1, keepdims=True) + b2.reshape(1, 1)


def xavier_uniform(key, fan_out, fan_in):
    # matches nn.init.xavier_uniform_ on a torch Linear weight of shape (fan_out, fan_in)
    limit = (6.0 / (fan_in + fan_out)) ** 0.5
    return jax.random.uniform(key, (fan_out, fan_in), jnp.float32, -limit, limit)


if __name__ == "__main__":
    # synthetic config: bert_hidden_size=32, with_mention_width=True, embedding_dimension=32
    #   -> input_layer = 32*3 + 32 = 128; hidden_layer = 128
    bert_hidden_size = 32
    embedding_dimension = 32
    hidden_layer = 128
    input_layer = bert_hidden_size * 3 + embedding_dimension   # 128
    n_spans = 203   # deliberately ragged -> exercises cdiv grid + trimmed output

    key = jax.random.PRNGKey(0)
    k_x, k_w1, k_b1, k_w2, k_b2 = jax.random.split(key, 5)

    # Xavier-uniform weights, uniform(0,1) biases (mirrors init_weights); stored transposed.
    w1_t = xavier_uniform(k_w1, hidden_layer, input_layer)    # torch layout (H, D)
    w2_t = xavier_uniform(k_w2, 1, hidden_layer)              # torch layout (1, H)
    w1 = jnp.transpose(w1_t)                                  # (D, H) as required
    w2 = w2_t                                                 # (1, H) row
    b1 = jax.random.uniform(k_b1, (hidden_layer,), jnp.float32)
    b2 = jax.random.uniform(k_b2, (1,), jnp.float32)

    x = jax.random.normal(k_x, (n_spans, input_layer), jnp.float32)

    ref = span_scorer_ref(x, w1, b1, w2, b2)

    # f32 path, single grid step (tm clamped to N)
    out_f32 = jax.block_until_ready(span_scorer(x, w1, b1, w2, b2))
    assert out_f32.shape == (n_spans, 1)
    assert jnp.allclose(out_f32, ref, atol=1e-3, rtol=1e-3)

    # multi-step ragged grid (tm=64 -> 4 grid steps, last block partial, output trimmed)
    out_multi = jax.block_until_ready(span_scorer(x, w1, b1, w2, b2, tm=64))
    assert out_multi.shape == (n_spans, 1)
    assert jnp.allclose(out_multi, ref, atol=1e-3, rtol=1e-3)

    # bf16 x emitted by the producer (no wrapper-side cast pass): loose tolerance
    out_bf16 = jax.block_until_ready(
        span_scorer(x.astype(jnp.bfloat16), w1, b1, w2, b2))
    assert out_bf16.shape == (n_spans, 1)
    assert jnp.allclose(out_bf16, ref, atol=5e-2, rtol=5e-2)

    print("KERNEL_OK")
</pallas_src>

<mosaic_0001>
module attributes {stable_mosaic.version = 11 : i64} {
  func.func @span_scorer_kernel(%arg0: i32, %arg1: memref<208x128xf32, #tpu.memory_space<vmem>>, %arg2: memref<128x128xf32, #tpu.memory_space<vmem>>, %arg3: memref<1x128xf32, #tpu.memory_space<vmem>>, %arg4: memref<1x128xf32, #tpu.memory_space<vmem>>, %arg5: memref<1xf32, #tpu.memory_space<smem>>, %arg6: memref<1x1x208xf32, #tpu.memory_space<vmem>>) attributes {dimension_semantics = [#tpu.dimension_semantics<parallel>], iteration_bounds = array<i64: 1>, scalar_prefetch = 0 : i64, scratch_operands = 0 : i64, tpu.core_type = #tpu.core_type<tc>, window_params = [{transform_indices = @transform_0, window_bounds = array<i64: 208, 128>}, {pipeline_mode = #tpu.pipeline_mode<synchronous>, transform_indices = @transform_1, window_bounds = array<i64: 128, 128>}, {pipeline_mode = #tpu.pipeline_mode<synchronous>, transform_indices = @transform_2, window_bounds = array<i64: 1, 128>}, {pipeline_mode = #tpu.pipeline_mode<synchronous>, transform_indices = @transform_3, window_bounds = array<i64: 1, 128>}, {transform_indices = @transform_4, window_bounds = array<i64: 1>}, {transform_indices = @transform_5, window_bounds = array<i64: 1, 1, 208>}]} {
    %c0 = arith.constant 0 : index
    %c0_0 = arith.constant 0 : index
    %0 = vector.load %arg1[%c0, %c0_0] : memref<208x128xf32, #tpu.memory_space<vmem>>, vector<208x128xf32>
    %c0_1 = arith.constant 0 : index
    %c0_2 = arith.constant 0 : index
    %1 = vector.load %arg2[%c0_1, %c0_2] : memref<128x128xf32, #tpu.memory_space<vmem>>, vector<128x128xf32>
    %cst = arith.constant dense<0.000000e+00> : vector<208x128xf32>
    %2 = tpu.matmul %0, %1, %cst {dimension_numbers = #tpu.dot_dimension_numbers<[1], [0], [0], [1], [0, 0, 1, 1], [], []>} : vector<208x128xf32>, vector<128x128xf32>, vector<208x128xf32> -> vector<208x128xf32>
    %c0_3 = arith.constant 0 : index
    %c0_4 = arith.constant 0 : index
    %3 = vector.load %arg3[%c0_3, %c0_4] : memref<1x128xf32, #tpu.memory_space<vmem>>, vector<1x128xf32>
    %4 = vector.broadcast %3 : vector<1x128xf32> to vector<208x128xf32>
    %5 = arith.addf %2, %4 : vector<208x128xf32>
    %cst_5 = arith.constant 0.000000e+00 : f32
    %6 = vector.broadcast %cst_5 : f32 to vector<208x128xf32>
    %7 = arith.maximumf %5, %6 : vector<208x128xf32>
    %c0_6 = arith.constant 0 : index
    %c0_7 = arith.constant 0 : index
    %8 = vector.load %arg4[%c0_6, %c0_7] : memref<1x128xf32, #tpu.memory_space<vmem>>, vector<1x128xf32>
    %cst_8 = arith.constant dense<0.000000e+00> : vector<1x208xf32>
    %9 = tpu.matmul %8, %7, %cst_8 {dimension_numbers = #tpu.dot_dimension_numbers<[1], [1], [0], [0], [0, 0, 1, 0], [], []>} : vector<1x128xf32>, vector<208x128xf32>, vector<1x208xf32> -> vector<1x208xf32>
    %c0_9 = arith.constant 0 : index
    %10 = memref.load %arg5[%c0_9] : memref<1xf32, #tpu.memory_space<smem>>
    %11 = vector.broadcast %10 : f32 to vector<1x208xf32>
    %12 = arith.addf %9, %11 : vector<1x208xf32>
    %13 = vector.shape_cast %12 : vector<1x208xf32> to vector<1x1x208xf32>
    %c0_10 = arith.constant 0 : index
    %c0_11 = arith.constant 0 : index
    %c0_12 = arith.constant 0 : index
    %14 = vector.load %arg6[%c0_10, %c0_11, %c0_12] : memref<1x1x208xf32, #tpu.memory_space<vmem>>, vector<1x1x208xf32>
    tpu.vector_store %arg6[%c0_10, %c0_11, %c0_12], %13 {strides = array<i32>} : memref<1x1x208xf32, #tpu.memory_space<vmem>>, vector<1x1x208xf32>,
    return
  }
  func.func @transform_0(%arg0: i32) -> (i32, i32) {
    %c0_i32 = arith.constant 0 : i32
    %c0_i32_0 = arith.constant 0 : i32
    return %arg0, %c0_i32 : i32, i32
  }
  func.func @transform_1(%arg0: i32) -> (i32, i32) {
    %c0_i32 = arith.constant 0 : i32
    %c0_i32_0 = arith.constant 0 : i32
    %c0_i32_1 = arith.constant 0 : i32
    return %c0_i32, %c0_i32_0 : i32, i32
  }
  func.func @transform_2(%arg0: i32) -> (i32, i32) {
    %c0_i32 = arith.constant 0 : i32
    %c0_i32_0 = arith.constant 0 : i32
    %c0_i32_1 = arith.constant 0 : i32
    return %c0_i32, %c0_i32_0 : i32, i32
  }
  func.func @transform_3(%arg0: i32) -> (i32, i32) {
    %c0_i32 = arith.constant 0 : i32
    %c0_i32_0 = arith.constant 0 : i32
    %c0_i32_1 = arith.constant 0 : i32
    return %c0_i32, %c0_i32_0 : i32, i32
  }
  func.func @transform_4(%arg0: i32) -> i32 {
    %c0_i32 = arith.constant 0 : i32
    %c0_i32_0 = arith.constant 0 : i32
    return %c0_i32 : i32
  }
  func.func @transform_5(%arg0: i32) -> (i32, i32, i32) {
    %c0_i32 = arith.constant 0 : i32
    %c0_i32_0 = arith.constant 0 : i32
    %c0_i32_1 = arith.constant 0 : i32
    return %arg0, %c0_i32, %c0_i32_0 : i32, i32, i32
  }
}

</mosaic_0001>

<bundles_post_ra>
// kernel: tpu_custom_call.1
= control target key start
LH: loop header
LB: loop body
LE: loop exit
PB: predicated region body
PF: predicated region fallthrough
CT: control target
= control target key end

     0   :  { %11 = vsyncpa [#allocation4], 0  ;;  %s822_s0 = inlined_call_operand.hbm [shape: f32[203,128], index: 0, kind: input, shape index: {}]   ;;  %s823_s1 = inlined_call_operand.hbm [shape: f32[128,128], index: 1, kind: input, shape index: {}]   ;;  %s824_s2 = inlined_call_operand.vmem [shape: f32[1,128], index: 2, kind: input, shape index: {}]   ;;  %s825_s3 = inlined_call_operand.vmem [shape: f32[1,128], index: 3, kind: input, shape index: {}]   ;;  %s826_s4 = inlined_call_operand.<no memory space> [shape: f32[1], index: 4, kind: input, shape index: {}]   ;;  %s827_s5 = inlined_call_operand.hbm [shape: f32[1,1,208], index: 5, kind: output, shape index: {}]  }
   0x1   :  { %12 = vsyncpa [#allocation7], 0 }
   0x2   :  { %13 = vsyncpa [#allocation5], 0  ;;  %s698_s18 = smov [#allocation3]   ;;  %s626_s22 = scalar_lea.hbm %s822_s0, 3328 }
   0x3   :  { %s19_s19 = sshll.u32 %s698_s18, 4  ;;  %p627_p0 = scmp.ne.s32.totalorder %s822_s0, %s626_s22  ;;  %s20_s19 = int_to_ptr.vmem [resolvable:$true] %s19_s19 }
   0x4   :  { %p630_p1 = scmp.lt.u32.totalorder %s626_s22, %s822_s0 }
   0x6   :  { %p632_p2 = pnand %p630_p1, %p627_p0 }
   0x8   :  { %635 = shalt.err (!%p632_p2)
}
   0x9   :  { %s636_s27 = scalar_lea.vmem %s20_s19, 3328  ;;  %p641_p4 = scmp.lt.s32.totalorder %s20_s19, %s20_s19 }
   0xa   :  { %p637_p3 = scmp.ne.s32.totalorder %s20_s19, %s636_s27  ;;  %p642_p5 = scmp.lt.s32.totalorder %s636_s27, %s636_s27 }
   0xc   :  { %p643_p6 = por %p642_p5, %p641_p4 }
   0xe   :  { %p644_p7 = pnand %p643_p6, %p637_p3 }
  0x10   :  { %647 = shalt.err (!%p644_p7)
}
  0x11   :  { %s699_s28 = smov 128   ;;  %s700_s29 = smov 8  }
  0x12   :  { %25 = dma.hbm_to_vmem [thread:$0]  %s822_s0, 3328, %s20_s19, [#allocation4], %s699_s28, %s699_s28, %s700_s29  }
  0x13   :  { %s701_s7 = smov [#allocation6]   ;;  %s648_s11 = scalar_lea.hbm %s823_s1, 2048 }
  0x14   :  { %s31_s8 = sshll.u32 %s701_s7, 4  ;;  %p649_p8 = scmp.ne.s32.totalorder %s823_s1, %s648_s11  ;;  %s32_s8 = int_to_ptr.vmem [resolvable:$true] %s31_s8 }
  0x15   :  { %p652_p9 = scmp.lt.u32.totalorder %s648_s11, %s823_s1 }
  0x17   :  { %p654_p10 = pnand %p652_p9, %p649_p8 }
  0x19   :  { %657 = shalt.err (!%p654_p10)
}
  0x1a   :  { %s658_s16 = scalar_lea.vmem %s32_s8, 2048  ;;  %p663_p12 = scmp.lt.s32.totalorder %s32_s8, %s32_s8 }
  0x1b   :  { %p659_p11 = scmp.ne.s32.totalorder %s32_s8, %s658_s16  ;;  %p664_p13 = scmp.lt.s32.totalorder %s658_s16, %s658_s16 }
  0x1d   :  { %p665_p0 = por %p664_p13, %p663_p12 }
  0x1f   :  { %p666_p1 = pnand %p665_p0, %p659_p11 }
  0x21   :  { %669 = shalt.err (!%p666_p1)
}
  0x22   :  { %37 = dma.hbm_to_vmem [thread:$0]  %s823_s1, 2048, %s32_s8, [#allocation7], %s699_s28, %s699_s28, %s700_s29  }
  0x23   :  { %692 = dma.done.wait [#allocation4], 3328  }
  0x24   :  { %693 = vsyncadd [#allocation4], 4294963968 }
  0x25   :  { %694 = dma.done.wait [#allocation7], 2048  }
  0x26   :  { %695 = vsyncadd [#allocation7], 4294965248  ;;  %v76_v0 = vld [vmem:[#allocation6] sm:$0xff]  ;;  %v77_v1 = vld [vmem:[#allocation6 + $0x8] sm:$0xff]  ;;  %v702_v50 = vmov 0.0|0.0   ;;  %v703_v51 = vmov 0.0  }
  0x27   :  { %v78_v2 = vld [vmem:[#allocation6 + $0x10] sm:$0xff]  ;;  %v547_v3 = vpack.c.bf16 %v77_v1, %v76_v0  ;;  %v79_v4 = vld [vmem:[#allocation6 + $0x18] sm:$0xff]  ;;  %v80_v6 = vld [vmem:[#allocation6 + $0x20] sm:$0xff]  ;;  %579 = vmatprep.subr.bf16.mxu1 %v702_v50  ;;  %387 = vmatprep.mubr.f32.mxu1 %v703_v51  ;;  %s705_s22 = smov [#allocation8]  }
  0x28   :  { %v551_v5 = vpack.c.bf16 %v79_v4, %v78_v2  ;;  %v81_v7 = vld [vmem:[#allocation6 + $0x28] sm:$0xff]  ;;  %v50_v9 = vld [vmem:[#allocation3] sm:$0xff]  ;;  %v83_v11 = vld [vmem:[#allocation6 + $0x38] sm:$0xff]  ;;  %s423_s23 = sshll.u32 %s705_s22, 4  ;;  %s424_s23 = int_to_ptr.vmem [resolvable:$true] %s423_s23 }
  0x29   :  { %548 = vmatprep.subr.bf16.mxu0 %v547_v3  ;;  %v555_v8 = vpack.c.bf16 %v81_v7, %v80_v6  ;;  %v82_v10 = vld [vmem:[#allocation6 + $0x30] sm:$0xff]  ;;  %508 = vmatprep.mubr.f32.mxu0 %v50_v9  ;;  %v84_v13 = vld [vmem:[#allocation6 + $0x40] sm:$0xff]  ;;  %v85_v14 = vld [vmem:[#allocation6 + $0x48] sm:$0xff]  ;;  %p675_p3 = scmp.lt.s32.totalorder %s424_s23, %s424_s23 }
  0x2a   :  { %550 = vmatpush3.bf16.msra.mxu0 %v547_v3  ;;  %v559_v12 = vpack.c.bf16 %v83_v11, %v82_v10  ;;  %v563_v15 = vpack.c.bf16 %v85_v14, %v84_v13  ;;  %v86_v16 = vld [vmem:[#allocation6 + $0x50] sm:$0xff]  ;;  %v87_v17 = vld [vmem:[#allocation6 + $0x58] sm:$0xff]  ;;  %v88_v19 = vld [vmem:[#allocation6 + $0x60] sm:$0xff] }
  0x2b   :  { %552 = vmatprep.subr.bf16.mxu0 %v551_v5  ;;  %v567_v18 = vpack.c.bf16 %v87_v17, %v86_v16  ;;  %v89_v20 = vld [vmem:[#allocation6 + $0x68] sm:$0xff]  ;;  %v90_v22 = vld [vmem:[#allocation6 + $0x70] sm:$0xff]  ;;  %v91_v23 = vld [vmem:[#allocation6 + $0x78] sm:$0xff] }
  0x2c   :  { %v571_v21 = vpack.c.bf16 %v89_v20, %v88_v19  ;;  %v575_v24 = vpack.c.bf16 %v91_v23, %v90_v22  ;;  %v51_v25 = vld [vmem:[#allocation3 + $0x8] sm:$0xff]  ;;  %v52_v26 = vld [vmem:[#allocation3 + $0x10] sm:$0xff]  ;;  %v53_v27 = vld [vmem:[#allocation3 + $0x18] sm:$0xff] }
  0x2d   :  { %v54_v28 = vld [vmem:[#allocation3 + $0x20] sm:$0xff]  ;;  %v55_v29 = vld [vmem:[#allocation3 + $0x28] sm:$0xff]  ;;  %v56_v30 = vld [vmem:[#allocation3 + $0x30] sm:$0xff] }
  0x2e   :  { %554 = vmatpush3.bf16.msra.mxu0 %v551_v5  ;;  %v57_v31 = vld [vmem:[#allocation3 + $0x38] sm:$0xff]  ;;  %v58_v32 = vld [vmem:[#allocation3 + $0x40] sm:$0xff]  ;;  %v59_v33 = vld [vmem:[#allocation3 + $0x48] sm:$0xff] }
  0x2f   :  { %556 = vmatprep.subr.bf16.mxu0 %v555_v8  ;;  %v60_v34 = vld [vmem:[#allocation3 + $0x50] sm:$0xff]  ;;  %v61_v35 = vld [vmem:[#allocation3 + $0x58] sm:$0xff]  ;;  %v62_v36 = vld [vmem:[#allocation3 + $0x60] sm:$0xff] }
  0x30   :  { %v63_v37 = vld [vmem:[#allocation3 + $0x68] sm:$0xff]  ;;  %v64_v38 = vld [vmem:[#allocation3 + $0x70] sm:$0xff]  ;;  %v65_v39 = vld [vmem:[#allocation3 + $0x78] sm:$0xff] }
  0x31   :  { %v66_v40 = vld [vmem:[#allocation3 + $0x80] sm:$0xff]  ;;  %v67_v41 = vld [vmem:[#allocation3 + $0x88] sm:$0xff]  ;;  %v68_v42 = vld [vmem:[#allocation3 + $0x90] sm:$0xff] }
  0x32   :  { %558 = vmatpush3.bf16.msra.mxu0 %v555_v8  ;;  %v69_v43 = vld [vmem:[#allocation3 + $0x98] sm:$0xff]  ;;  %v70_v44 = vld [vmem:[#allocation3 + $0xa0] sm:$0xff]  ;;  %v71_v45 = vld [vmem:[#allocation3 + $0xa8] sm:$0xff] }
  0x33   :  { %560 = vmatprep.subr.bf16.mxu0 %v559_v12  ;;  %v72_v46 = vld [vmem:[#allocation3 + $0xb0] sm:$0xff]  ;;  %v73_v47 = vld [vmem:[#allocation3 + $0xb8] sm:$0xff]  ;;  %v74_v48 = vld [vmem:[#allocation3 + $0xc0] sm:$0xff] }
  0x34   :  { %v75_v49 = vld [vmem:[#allocation3 + $0xc8] sm:$0xff]  ;;  %v764_v52 = vld [vmem:[%s824_s2] ss:$0 sm:$0xff] }
  0x36   :  { %562 = vmatpush3.bf16.msra.mxu0 %v559_v12 }
  0x37   :  { %564 = vmatprep.subr.bf16.mxu0 %v563_v15 }
  0x3a   :  { %566 = vmatpush3.bf16.msra.mxu0 %v563_v15 }
  0x3b   :  { %568 = vmatprep.subr.bf16.mxu0 %v567_v18 }
  0x3e   :  { %570 = vmatpush3.bf16.msra.mxu0 %v567_v18 }
  0x3f   :  { %572 = vmatprep.subr.bf16.mxu0 %v571_v21 }
  0x42   :  { %574 = vmatpush3.bf16.msra.mxu0 %v571_v21 }
  0x43   :  { %576 = vmatprep.subr.bf16.mxu0 %v575_v24 }
  0x46   :  { %578 = vmatpush3.bf16.msra.mxu0 %v575_v24 }
  0x49   :  { %509 = vmatmul.mubr.f32.vlgmr.msra.gmra.mrb[0].mxu0 %v51_v25 }
  0x4a   :  { %511 = vmatprep.mubr.f32.mxu0 %v52_v26 }
  0x4d   :  { %512 = vmatmul.mubr.f32.gmra.mrb[2].mxu0 %v53_v27 }
  0x4e   :  { %514 = vmatprep.mubr.f32.mxu0 %v54_v28 }
  0x51   :  { %515 = vmatmul.mubr.f32.gmra.mrb[4].mxu0 %v55_v29 }
  0x52   :  { %517 = vmatprep.mubr.f32.mxu0 %v56_v30 }
  0x55   :  { %518 = vmatmul.mubr.f32.gmra.mrb[6].mxu0 %v57_v31 }
  0x56   :  { %520 = vmatprep.mubr.f32.mxu0 %v58_v32 }
  0x59   :  { %521 = vmatmul.mubr.f32.gmra.mrb[8].mxu0 %v59_v33 }
  0x5a   :  { %523 = vmatprep.mubr.f32.mxu0 %v60_v34 }
  0x5d   :  { %524 = vmatmul.mubr.f32.gmra.mrb[10].mxu0 %v61_v35 }
  0x5e   :  { %526 = vmatprep.mubr.f32.mxu0 %v62_v36 }
  0x61   :  { %527 = vmatmul.mubr.f32.gmra.mrb[12].mxu0 %v63_v37 }
  0x62   :  { %529 = vmatprep.mubr.f32.mxu0 %v64_v38 }
  0x65   :  { %530 = vmatmul.mubr.f32.gmra.mrb[14].mxu0 %v65_v39 }
  0x66   :  { %532 = vmatprep.mubr.f32.mxu0 %v66_v40 }
  0x69   :  { %533 = vmatmul.mubr.f32.gmra.mrb[16].mxu0 %v67_v41 }
  0x6a   :  { %535 = vmatprep.mubr.f32.mxu0 %v68_v42 }
  0x6d   :  { %536 = vmatmul.mubr.f32.gmra.mrb[18].mxu0 %v69_v43 }
  0x6e   :  { %538 = vmatprep.mubr.f32.mxu0 %v70_v44 }
  0x71   :  { %539 = vmatmul.mubr.f32.gmra.mrb[20].mxu0 %v71_v45 }
  0x72   :  { %541 = vmatprep.mubr.f32.mxu0 %v72_v46 }
  0x75   :  { %542 = vmatmul.mubr.f32.gmra.mrb[22].mxu0 %v73_v47 }
  0x76   :  { %544 = vmatprep.mubr.f32.mxu0 %v74_v48 }
  0x79   :  { %545 = vmatmul.mubr.f32.gmra.mrb[24].mxu0 %v75_v49 }
 0x11c   :  { %v510_v53 = vpop.f32.mrb[0].mxu0 }
 0x11d   :  { %v171_v54 = vadd.f32 %v510_v53, %v764_v52  ;;  %v165_v55 = vpop.f32.mrb[1].mxu0 }
 0x11e   :  { %v166_v56 = vadd.f32 %v764_v52, %v165_v55 }
 0x11f   :  { %v295_v57 = vmax.f32 %v171_v54, 0.0 }
 0x120   :  { %v294_v58 = vmax.f32 %v166_v56, 0.0  ;;  %v513_v59 = vpop.f32.mrb[2].mxu0 }
 0x121   :  { %v181_v60 = vadd.f32 %v513_v59, %v764_v52  ;;  %v175_v61 = vpop.f32.mrb[3].mxu0 }
 0x122   :  { %v176_v62 = vadd.f32 %v764_v52, %v175_v61  ;;  %v580_v63 = vpack.c.bf16 %v295_v57, %v294_v58 }
 0x123   :  { %v297_v0 = vmax.f32 %v181_v60, 0.0 }
 0x124   :  { %v296_v1 = vmax.f32 %v176_v62, 0.0  ;;  %581 = vmatpush1.bf16.xpose.msra.mxu1 %v580_v63  ;;  %v516_v2 = vpop.f32.mrb[4].mxu0 }
 0x125   :  { %v191_v3 = vadd.f32 %v516_v2, %v764_v52  ;;  %582 = vmatprep.subr.bf16.mxu1 %v702_v50  ;;  %v185_v4 = vpop.f32.mrb[5].mxu0 }
 0x126   :  { %v583_v5 = vpack.c.bf16 %v297_v0, %v296_v1  ;;  %v186_v6 = vadd.f32 %v764_v52, %v185_v4 }
 0x127   :  { %v299_v7 = vmax.f32 %v191_v3, 0.0 }
 0x128   :  { %v298_v8 = vmax.f32 %v186_v6, 0.0  ;;  %v519_v9 = vpop.f32.mrb[6].mxu0 }
 0x129   :  { %v201_v10 = vadd.f32 %v519_v9, %v764_v52  ;;  %v195_v11 = vpop.f32.mrb[7].mxu0 }
 0x12a   :  { %v586_v12 = vpack.c.bf16 %v299_v7, %v298_v8  ;;  %v196_v13 = vadd.f32 %v764_v52, %v195_v11 }
 0x12b   :  { %v301_v14 = vmax.f32 %v201_v10, 0.0 }
 0x12c   :  { %584 = vmatpush1.bf16.xpose.msra.mxu1 %v583_v5  ;;  %v300_v15 = vmax.f32 %v196_v13, 0.0  ;;  %v522_v16 = vpop.f32.mrb[8].mxu0 }
 0x12d   :  { %585 = vmatprep.subr.bf16.mxu1 %v702_v50  ;;  %v211_v17 = vadd.f32 %v522_v16, %v764_v52  ;;  %v205_v18 = vpop.f32.mrb[9].mxu0 }
 0x12e   :  { %v589_v19 = vpack.c.bf16 %v301_v14, %v300_v15  ;;  %v206_v20 = vadd.f32 %v764_v52, %v205_v18  ;;  %v704_v18 = vmov 1966171168  }
 0x12f   :  { %v303_v21 = vmax.f32 %v211_v17, 0.0 }
 0x130   :  { %v302_v22 = vmax.f32 %v206_v20, 0.0  ;;  %v525_v23 = vpop.f32.mrb[10].mxu0  ;;  %v400_v20 = vlaneseq }
 0x131   :  { %v221_v24 = vadd.f32 %v525_v23, %v764_v52  ;;  %v215_v25 = vpop.f32.mrb[11].mxu0 }
 0x132   :  { %v592_v26 = vpack.c.bf16 %v303_v21, %v302_v22  ;;  %v216_v27 = vadd.f32 %v764_v52, %v215_v25  ;;  %v322_v21 = vstv %s826_s4  ;;  %v401_v23 = vshrl.u32 %v400_v20, 7 }
 0x133   :  { %v305_v28 = vmax.f32 %v221_v24, 0.0  ;;  %vm414_vm0 = vcmp.lt.s32.totalorder %v400_v20, 208 }
 0x134   :  { %587 = vmatpush1.bf16.xpose.msra.mxu1 %v586_v12  ;;  %v304_v29 = vmax.f32 %v216_v27, 0.0  ;;  %v528_v30 = vpop.f32.mrb[12].mxu0 }
 0x135   :  { %588 = vmatprep.subr.bf16.mxu1 %v702_v50  ;;  %v231_v31 = vadd.f32 %v528_v30, %v764_v52  ;;  %v225_v32 = vpop.f32.mrb[13].mxu0 }
 0x136   :  { %v595_v33 = vpack.c.bf16 %v305_v28, %v304_v29  ;;  %v226_v34 = vadd.f32 %v764_v52, %v225_v32 }
 0x137   :  { %v307_v35 = vmax.f32 %v231_v31, 0.0 }
 0x138   :  { %v306_v36 = vmax.f32 %v226_v34, 0.0  ;;  %v531_v37 = vpop.f32.mrb[14].mxu0 }
 0x139   :  { %v241_v38 = vadd.f32 %v531_v37, %v764_v52  ;;  %v235_v39 = vpop.f32.mrb[15].mxu0 }
 0x13a   :  { %v598_v40 = vpack.c.bf16 %v307_v35, %v306_v36  ;;  %v236_v41 = vadd.f32 %v764_v52, %v235_v39 }
 0x13b   :  { %v309_v42 = vmax.f32 %v241_v38, 0.0 }
 0x13c   :  { %590 = vmatpush1.bf16.xpose.msra.mxu1 %v589_v19  ;;  %v308_v43 = vmax.f32 %v236_v41, 0.0  ;;  %v534_v44 = vpop.f32.mrb[16].mxu0  ;;  %v398_v19 = vunpack.c.l.s4 %v704_v18 }
 0x13d   :  { %591 = vmatprep.subr.bf16.mxu1 %v702_v50  ;;  %v251_v45 = vadd.f32 %v534_v44, %v764_v52  ;;  %v245_v46 = vpop.f32.mrb[17].mxu0 }
 0x13e   :  { %v601_v47 = vpack.c.bf16 %v309_v42, %v308_v43  ;;  %v246_v48 = vadd.f32 %v764_v52, %v245_v46  ;;  %v399_v22 = vunpack.c.0.s8 %v398_v19 }
 0x13f   :  { %v311_v49 = vmax.f32 %v251_v45, 0.0 }
 0x140   :  { %v310_v51 = vmax.f32 %v246_v48, 0.0  ;;  %v537_v53 = vpop.f32.mrb[18].mxu0 }
 0x141   :  { %v261_v54 = vadd.f32 %v537_v53, %v764_v52  ;;  %v255_v55 = vpop.f32.mrb[19].mxu0 }
 0x142   :  { %v604_v56 = vpack.c.bf16 %v311_v49, %v310_v51  ;;  %v256_v57 = vadd.f32 %v764_v52, %v255_v55 }
 0x143   :  { %v313_v58 = vmax.f32 %v261_v54, 0.0 }
 0x144   :  { %593 = vmatpush1.bf16.xpose.msra.mxu1 %v592_v26  ;;  %v312_v59 = vmax.f32 %v256_v57, 0.0  ;;  %v540_v60 = vpop.f32.mrb[20].mxu0 }
 0x145   :  { %594 = vmatprep.subr.bf16.mxu1 %v702_v50  ;;  %v271_v61 = vadd.f32 %v540_v60, %v764_v52  ;;  %v265_v62 = vpop.f32.mrb[21].mxu0 }
 0x146   :  { %v607_v63 = vpack.c.bf16 %v313_v58, %v312_v59  ;;  %v266_v0 = vadd.f32 %v764_v52, %v265_v62 }
 0x147   :  { %v315_v1 = vmax.f32 %v271_v61, 0.0 }
 0x148   :  { %v314_v2 = vmax.f32 %v266_v0, 0.0  ;;  %v543_v3 = vpop.f32.mrb[22].mxu0 }
 0x149   :  { %v281_v4 = vadd.f32 %v543_v3, %v764_v52  ;;  %v275_v5 = vpop.f32.mrb[23].mxu0 }
 0x14a   :  { %v610_v6 = vpack.c.bf16 %v315_v1, %v314_v2  ;;  %v276_v7 = vadd.f32 %v764_v52, %v275_v5 }
 0x14b   :  { %v317_v8 = vmax.f32 %v281_v4, 0.0 }
 0x14c   :  { %596 = vmatpush1.bf16.xpose.msra.mxu1 %v595_v33  ;;  %v316_v9 = vmax.f32 %v276_v7, 0.0  ;;  %v546_v10 = vpop.f32.mrb[24].mxu0 }
 0x14d   :  { %597 = vmatprep.subr.bf16.mxu1 %v702_v50  ;;  %v291_v11 = vadd.f32 %v546_v10, %v764_v52  ;;  %v285_v12 = vpop.f32.mrb[25].mxu0 }
 0x14e   :  { %v613_v13 = vpack.c.bf16 %v317_v8, %v316_v9  ;;  %v286_v14 = vadd.f32 %v764_v52, %v285_v12  ;;  %v320_v52 = vld [vmem:[%s825_s3] sm:$0x1]  ;;  %s670_s3 = scalar_lea.vmem %s424_s23, 32 }
 0x14f   :  { %v319_v15 = vmax.f32 %v291_v11, 0.0  ;;  %p671_p2 = scmp.ne.s32.totalorder %s424_s23, %s670_s3  ;;  %p676_p4 = scmp.lt.s32.totalorder %s670_s3, %s670_s3 }
 0x150   :  { %v318_v16 = vmax.f32 %v286_v14, 0.0 }
 0x151   :  { %p677_p5 = por %p676_p4, %p675_p3 }
 0x152   :  { %v616_v17 = vpack.c.bf16 %v319_v15, %v318_v16 }
 0x153   :  { %p678_p6 = pnand %p677_p5, %p671_p2 }
 0x154   :  { %599 = vmatpush1.bf16.xpose.msra.mxu1 %v598_v40 }
 0x155   :  { %600 = vmatprep.subr.bf16.mxu1 %v702_v50 }
 0x15c   :  { %602 = vmatpush1.bf16.xpose.msra.mxu1 %v601_v47 }
 0x15d   :  { %603 = vmatprep.subr.bf16.mxu1 %v702_v50 }
 0x164   :  { %605 = vmatpush1.bf16.xpose.msra.mxu1 %v604_v56 }
 0x165   :  { %606 = vmatprep.subr.bf16.mxu1 %v702_v50 }
 0x16c   :  { %608 = vmatpush1.bf16.xpose.msra.mxu1 %v607_v63 }
 0x16d   :  { %609 = vmatprep.subr.bf16.mxu1 %v702_v50 }
 0x174   :  { %611 = vmatpush1.bf16.xpose.msra.mxu1 %v610_v6 }
 0x175   :  { %612 = vmatprep.subr.bf16.mxu1 %v702_v50 }
 0x17c   :  { %614 = vmatpush1.bf16.xpose.msra.mxu1 %v613_v13 }
 0x17d   :  { %615 = vmatprep.subr.bf16.mxu1 %v702_v50  ;;  %v402_v50 = vsub.s32 %v399_v22, %v401_v23 }
 0x184   :  { %617 = vmatpush1.bf16.xpose.msra.mxu1 %v616_v17 }
 0x18b   :  { %388 = vmatmul.mubr.f32.vlgmr.msra.gmra.mrb[0].mxu1 %v320_v52 }
 0x25e   :  { %v389_v24 = vpop.f32.mrb[0].mxu1 }
 0x25f   :  { %v390_v25 = vadd.f32 %v389_v24, %v322_v21  ;;  %v391_v26 = vpop.f32.mrb[1].mxu1 }
 0x260   :  { %v392_v27 = vadd.f32 %v391_v26, %v322_v21 }
 0x262   :  { %v396_v28 = vcombine.low %v390_v25, %v392_v27 }
 0x264   :  { %v403_v29 = vrot.slane %v396_v28, %v402_v50 }
 0x266   :  { %v410_v30 = vrot.slane %v403_v29, %v402_v50 }
 0x268   :  { %416 = vst.msk [vmem:[#allocation8] sm:$0x3] %vm414_vm0, %v410_v30 }
 0x269   :  { %681 = shalt.err (!%p678_p6)
}
 0x26a   :  { %s682_s25 = scalar_lea.hbm %s827_s5, 32 }
 0x26b   :  { %p683_p7 = scmp.ne.s32.totalorder %s827_s5, %s682_s25  ;;  %p686_p8 = scmp.lt.u32.totalorder %s682_s25, %s827_s5 }
 0x26d   :  { %p688_p9 = pnand %p686_p8, %p683_p7 }
 0x26f   :  { %691 = shalt.err (!%p688_p9)
}
 0x270   :  { %426 = dma.vmem_to_hbm [thread:$0]  %s424_s23, 32, %s827_s5, [#allocation5]  }
 0x271   :  { %696 = dma.done.wait [#allocation5], 32  }
 0x272   :  { %697 = vsyncadd [#allocation5], 4294967264 }
 0x273   :  { %430 = vsyncpa [#allocation4], 1 }
 0x274   :  { %431 = vsyncpa [#allocation7], 1 }
 0x275   :  { %432 = vsyncpa [#allocation5], 1 }

</bundles_post_ra>
